<compile_context>
chip_gen: v7x
topology: tpu7x:2x2x1
jax: 0.10.0
libtpu: 0.0.40
codegen_flags: <defaults>
</compile_context>

<pallas_src>
import math

import jax
import jax.numpy as jnp
from jax import lax
from jax.experimental import pallas as pl
from jax.experimental.pallas import tpu as pltpu


def _gelu(x):
    # exact (erf) GELU, matching torch.nn.GELU() default
    return 0.5 * x * (1.0 + lax.erf(x * (1.0 / math.sqrt(2.0))))


# -----------------------------------------------------------------------------
# Fused conv block kernel:
#   optional input transform:  GroupNorm(prev block) affine + GELU   (fuse_affine)
#   conv1d as ceil(k/s) unit-stride matmuls on the phase-packed input
#   optional per-channel mean/var emission for this block's GroupNorm (emit_stats)
#   optional output GELU                                             (out_gelu)
# -----------------------------------------------------------------------------
def _make_conv_kernel(*, k, stride, c_in, c_out, tile_l, n_blk, l_out,
                      has_halo, fuse_affine, emit_stats, out_gelu):
    n_q = -(-k // stride)          # number of tap groups
    q_max = n_q - 1                # halo rows (phase-packed units)

    def kernel(*refs):
        it = iter(refs)
        xr_ref = next(it)                                   # (1, tile_l, s*c_in)
        halo_ref = next(it) if has_halo else None           # (1, 1, q_max, s*c_in)
        scale_ref = next(it) if fuse_affine else None       # (1, 1, s*c_in) f32
        shift_ref = next(it) if fuse_affine else None       # (1, 1, s*c_in) f32
        w_refs = [next(it) for _ in range(n_q)]             # (n_p*c_in, c_out) bf16
        y_ref = next(it)                                    # (1, tile_l, c_out)
        stats_ref = next(it) if emit_stats else None        # (1, 2, c_out) f32
        mean_acc = next(it) if emit_stats else None         # VMEM (1, c_out) f32
        m2_acc = next(it) if emit_stats else None           # VMEM (1, c_out) f32

        i = pl.program_id(1)

        xf = xr_ref[...][0].astype(jnp.float32)             # (tile_l, s*c_in)
        if has_halo:
            hx = halo_ref[...][0, 0].astype(jnp.float32)    # (q_max, s*c_in)
            xf = jnp.concatenate([xf, hx], axis=0)          # (tile_l + q_max, s*c_in)

        if fuse_affine:
            # previous block's Fp32GroupNorm (per-channel affine) + GELU, applied on read
            xf = _gelu(xf * scale_ref[...][0] + shift_ref[...][0])

        x_ext = xf.astype(jnp.bfloat16)                     # bf16 MXU operands

        acc = jnp.zeros((tile_l, c_out), jnp.float32)
        for q in range(n_q):                                # static unroll over tap groups
            n_p = min(stride, k - q * stride)
            xs = x_ext[q:q + tile_l, : n_p * c_in]          # unit-stride slice of a value
            acc = acc + jnp.dot(xs, w_refs[q][...],
                                preferred_element_type=jnp.float32)

        if emit_stats:
            # Per-channel GroupNorm stats of this block's *stored* (bf16-rounded) output,
            # combined across L tiles with Chan's parallel-variance update (numerically
            # stable; avoids a raw sum-of-squares over the whole sequence).
            yb = acc.astype(y_ref.dtype).astype(jnp.float32)
            row = i * tile_l + lax.broadcasted_iota(jnp.int32, (tile_l, 1), 0)
            mask = row < l_out                              # drop padded tail rows
            n_t = jnp.minimum(l_out - i * tile_l, tile_l).astype(jnp.float32)
            t_mean = jnp.sum(jnp.where(mask, yb, 0.0), axis=0, keepdims=True) / n_t
            t_m2 = jnp.sum(jnp.where(mask, (yb - t_mean) ** 2, 0.0),
                           axis=0, keepdims=True)

            @pl.when(i == 0)
            def _():
                mean_acc[...] = jnp.zeros((1, c_out), jnp.float32)
                m2_acc[...] = jnp.zeros((1, c_out), jnp.float32)

            n_prev = jnp.minimum(i * tile_l, l_out).astype(jnp.float32)
            tot = n_prev + n_t
            delta = t_mean - mean_acc[...]
            mean_acc[...] = mean_acc[...] + delta * (n_t / tot)
            m2_acc[...] = m2_acc[...] + t_m2 + delta * delta * (n_prev * n_t / tot)

            @pl.when(i == n_blk - 1)
            def _():
                var = m2_acc[...] * (1.0 / float(l_out))    # biased var, like torch GN
                stats_ref[...] = jnp.concatenate([mean_acc[...], var], axis=0)[None]

        out = _gelu(acc) if out_gelu else acc
        y_ref[...] = out.astype(y_ref.dtype)[None]

    return kernel


def conv1d_block_pallas(x, l_valid, w, stride, *, scale=None, shift=None,
                        emit_stats=False, out_gelu=True,
                        out_dtype=jnp.bfloat16, tile_l=256):
    """One fused conv block.

    x: (B, P, C_in) channel-last activation; only the first `l_valid` rows are valid.
    w: (C_out, C_in, k) PyTorch-layout conv weight.
    Returns (y, stats, l_out): y (B, n_blk*tl, C_out) with the first l_out rows valid,
    stats (B, 2, C_out) = [mean; biased var] (or None).
    """
    B, p_phys, c_in = x.shape
    c_out, c_in_w, k = w.shape
    assert c_in_w == c_in
    s = stride
    l_out = (l_valid - k) // s + 1
    assert l_out > 0
    n_q = -(-k // s)
    q_max = n_q - 1

    # L tile: multiple of 8 sublanes, capped by tile_l (tune per generation:
    # ~1024 rows on v7x (64 MiB VMEM), ~2048 on v5e/v6e) and by the padded output length.
    tl = min(max(8, (tile_l // 8) * 8), ((l_out + 7) // 8) * 8)
    n_blk = -(-l_out // tl)
    l_r = n_blk * tl + q_max                 # phase-packed rows we index
    p_in = l_r * s                           # raw rows we need

    # Bring the activation to exactly p_in rows (prefix slice / zero pad), then phase-pack:
    # (B, p_in, C) -> (B, l_r, s*C) is a free reshape of contiguous data.
    # TODO(synk): in production the pad/slice would be folded into element-indexed BlockSpecs.
    if p_phys >= p_in:
        xp = x[:, :p_in, :]
    else:
        xp = jnp.pad(x, ((0, 0), (0, p_in - p_phys), (0, 0)))
    xr = xp.reshape(B, l_r, s * c_in)

    inputs = [xr]
    in_specs = [pl.BlockSpec((1, tl, s * c_in), lambda b, i: (b, i, 0))]

    has_halo = q_max > 0
    if has_halo:
        # the q_max extra phase-packed rows each tile needs (tiny side array), so the main
        # input keeps a plain non-overlapping Blocked spec.
        idx = (jnp.arange(n_blk)[:, None] + 1) * tl + jnp.arange(q_max)[None, :]
        halo = xr[:, idx, :]                                # (B, n_blk, q_max, s*c_in)
        inputs.append(halo)
        in_specs.append(pl.BlockSpec((1, 1, q_max, s * c_in),
                                     lambda b, i: (b, i, 0, 0)))

    fuse_affine = scale is not None
    if fuse_affine:
        # per-channel GN scale/shift of the previous block, tiled to the phase-packed
        # column order [p*C + c].
        scale_t = jnp.tile(scale.astype(jnp.float32), (1, s))[:, None, :]
        shift_t = jnp.tile(shift.astype(jnp.float32), (1, s))[:, None, :]
        inputs += [scale_t, shift_t]
        in_specs += [pl.BlockSpec((1, 1, s * c_in), lambda b, i: (b, 0, 0)),
                     pl.BlockSpec((1, 1, s * c_in), lambda b, i: (b, 0, 0))]

    # tap-group weights flattened to (n_p*c_in, c_out) matmul operands (bf16 for the MXU)
    for q in range(n_q):
        n_p = min(s, k - q * s)
        wq = jnp.transpose(w[:, :, q * s:q * s + n_p], (2, 1, 0))
        wq = wq.reshape(n_p * c_in, c_out).astype(jnp.bfloat16)
        inputs.append(wq)
        in_specs.append(pl.BlockSpec((n_p * c_in, c_out), lambda b, i: (0, 0)))

    out_shape = [jax.ShapeDtypeStruct((B, n_blk * tl, c_out), out_dtype)]
    out_specs = [pl.BlockSpec((1, tl, c_out), lambda b, i: (b, i, 0))]
    scratch = []
    if emit_stats:
        out_shape.append(jax.ShapeDtypeStruct((B, 2, c_out), jnp.float32))
        out_specs.append(pl.BlockSpec((1, 2, c_out), lambda b, i: (b, 0, 0)))
        scratch = [pltpu.VMEM((1, c_out), jnp.float32),
                   pltpu.VMEM((1, c_out), jnp.float32)]

    kernel = _make_conv_kernel(
        k=k, stride=s, c_in=c_in, c_out=c_out, tile_l=tl, n_blk=n_blk, l_out=l_out,
        has_halo=has_halo, fuse_affine=fuse_affine,
        emit_stats=emit_stats, out_gelu=out_gelu)

    # Stats accumulate across the L axis -> keep it sequential ('arbitrary'); otherwise both
    # axes are independent and can be sharded across TensorCores (megacore on v7x).
    dims = ("parallel", "arbitrary") if emit_stats else ("parallel", "parallel")

    outs = pl.pallas_call(
        kernel,
        grid=(B, n_blk),
        in_specs=in_specs,
        out_specs=out_specs,
        out_shape=out_shape,
        scratch_shapes=scratch,
        compiler_params=pltpu.CompilerParams(dimension_semantics=dims),
    )(*inputs)

    y = outs[0]
    stats = outs[1] if emit_stats else None
    return y, stats, l_out


# -----------------------------------------------------------------------------
# Parameter init (deterministic; mirrors the module's __init__ shapes / inits)
# -----------------------------------------------------------------------------
def init_params(conv_layers, key):
    # TODO(synk): mode='layer_norm' and conv_bias=True variants of the module are not
    # implemented; this covers the module defaults (mode='default', conv_bias=False).
    params = []
    in_d = 1
    for i, (dim, k, stride) in enumerate(conv_layers):
        key, sub = jax.random.split(key)
        std = math.sqrt(2.0 / (in_d * k))      # kaiming_normal_ (fan_in, gain=sqrt(2))
        w = std * jax.random.normal(sub, (dim, in_d, k), jnp.float32)  # (Cout, Cin, k)
        p = {"w": w, "stride": stride}
        if i == 0:                              # mode='default' -> GroupNorm on block 0 only
            p["gamma"] = jnp.ones((dim,), jnp.float32)
            p["beta"] = jnp.zeros((dim,), jnp.float32)
        params.append(p)
        in_d = dim
    return params


# -----------------------------------------------------------------------------
# Forward pass
# -----------------------------------------------------------------------------
def conv_feature_extraction_forward(x, params, tile_l=256, eps=1e-5):
    """x: (B, T) float waveform.  Returns (B, C_last, L_final) float32 (PyTorch NCW)."""
    h = x[:, :, None].astype(jnp.bfloat16)      # (B, L, C=1), bf16 inter-layer activations
    l_valid = x.shape[1]
    scale = shift = None
    n_layers = len(params)
    for li, p in enumerate(params):
        is_first = "gamma" in p
        is_last = li == n_layers - 1
        # TODO(synk): nn.Dropout(p=0.0) is an identity at inference; intentionally omitted.
        h, stats, l_valid = conv1d_block_pallas(
            h, l_valid, p["w"], p["stride"],
            scale=scale, shift=shift,
            emit_stats=is_first,
            out_gelu=not is_first,   # block-0's GELU follows GN and is applied on read by block 1
            out_dtype=jnp.float32 if is_last else jnp.bfloat16,
            tile_l=tile_l)
        if is_first:
            mean, var = stats[:, 0, :], stats[:, 1, :]
            rstd = lax.rsqrt(var + eps)
            scale = p["gamma"][None, :] * rstd           # (B, C)
            shift = p["beta"][None, :] - mean * scale    # (B, C)
        else:
            scale = shift = None

    h = h[:, :l_valid, :].astype(jnp.float32)
    if scale is not None:
        # single-block edge case: GN + GELU were not consumed by a following conv kernel
        h = _gelu(h * scale[:, None, :] + shift[:, None, :])
    return jnp.transpose(h, (0, 2, 1))                    # back to PyTorch NCW (B, C, L)


# -----------------------------------------------------------------------------
# Pure-JAX reference (correctness check only) mirroring the kernel's precision
# policy: bf16 matmul operands / stored activations, f32 accumulation & norm math.
# -----------------------------------------------------------------------------
def reference_forward(x, params, eps=1e-5):
    h = x[:, None, :].astype(jnp.float32)                 # (B, 1, T) NCW
    for p in params:
        y = lax.conv_general_dilated(
            h.astype(jnp.bfloat16), p["w"].astype(jnp.bfloat16),
            (p["stride"],), "VALID",
            dimension_numbers=("NCH", "OIH", "NCH"),
            preferred_element_type=jnp.float32)
        if "gamma" in p:
            y = y.astype(jnp.bfloat16).astype(jnp.float32)   # stored-activation rounding
            mean = jnp.mean(y, axis=-1, keepdims=True)
            var = jnp.mean((y - mean) ** 2, axis=-1, keepdims=True)
            y = (y - mean) * lax.rsqrt(var + eps)
            y = y * p["gamma"][None, :, None] + p["beta"][None, :, None]
        h = _gelu(y)
    return h


if __name__ == "__main__":
    # small config mirroring the wav2vec2 pattern: (dim, kernel, stride)
    conv_layers = [(16, 10, 5), (16, 3, 2), (16, 2, 2)]
    B, T = 2, 123

    key = jax.random.PRNGKey(0)
    kparam, kx = jax.random.split(key)
    x = jax.random.normal(kx, (B, T), jnp.float32)
    params = init_params(conv_layers, kparam)

    # tiny tile so the test exercises multi-tile pipelining, the halo path and the masked /
    # tiled GroupNorm statistics (real 512-channel configs would use tile_l ~ 256-1024).
    out = conv_feature_extraction_forward(x, params, tile_l=8)
    out = jax.block_until_ready(out)

    ref = reference_forward(x, params)
    assert out.shape == ref.shape, (out.shape, ref.shape)
    max_err = float(jnp.max(jnp.abs(out - ref)))
    assert bool(jnp.allclose(out, ref, atol=1e-2, rtol=1e-2)), (
        "mismatch vs reference, max |err| = %g" % max_err)

    print("KERNEL_OK")
</pallas_src>

<mosaic_0001>
module attributes {stable_mosaic.version = 11 : i64} {
  func.func @kernel(%arg0: i32, %arg1: i32, %arg2: memref<1x8x5xbf16, #tpu.memory_space<vmem>>, %arg3: memref<1x1x1x5xbf16, #tpu.memory_space<vmem>>, %arg4: memref<5x16xbf16, #tpu.memory_space<vmem>>, %arg5: memref<5x16xbf16, #tpu.memory_space<vmem>>, %arg6: memref<1x8x16xbf16, #tpu.memory_space<vmem>>, %arg7: memref<1x2x16xf32, #tpu.memory_space<vmem>>, %arg8: memref<1x16xf32, #tpu.memory_space<vmem>>, %arg9: memref<1x16xf32, #tpu.memory_space<vmem>>) attributes {dimension_semantics = [#tpu.dimension_semantics<parallel>, #tpu.dimension_semantics<arbitrary>], iteration_bounds = array<i64: 2, 3>, scalar_prefetch = 0 : i64, scratch_operands = 2 : i64, tpu.core_type = #tpu.core_type<tc>, window_params = [{transform_indices = @transform_0, window_bounds = array<i64: 1, 8, 5>}, {transform_indices = @transform_1, window_bounds = array<i64: 1, 1, 1, 5>}, {pipeline_mode = #tpu.pipeline_mode<synchronous>, transform_indices = @transform_2, window_bounds = array<i64: 5, 16>}, {pipeline_mode = #tpu.pipeline_mode<synchronous>, transform_indices = @transform_3, window_bounds = array<i64: 5, 16>}, {transform_indices = @transform_4, window_bounds = array<i64: 1, 8, 16>}, {transform_indices = @transform_5, window_bounds = array<i64: 1, 2, 16>}]} {
    %c0 = arith.constant 0 : index
    %c0_0 = arith.constant 0 : index
    %c0_1 = arith.constant 0 : index
    %0 = vector.load %arg2[%c0, %c0_0, %c0_1] : memref<1x8x5xbf16, #tpu.memory_space<vmem>>, vector<1x8x5xbf16>
    %1 = vector.shape_cast %0 : vector<1x8x5xbf16> to vector<8x5xbf16>
    %2 = arith.extf %1 : vector<8x5xbf16> to vector<8x5xf32>
    %c0_2 = arith.constant 0 : index
    %c0_3 = arith.constant 0 : index
    %c0_4 = arith.constant 0 : index
    %c0_5 = arith.constant 0 : index
    %3 = vector.load %arg3[%c0_2, %c0_3, %c0_4, %c0_5] : memref<1x1x1x5xbf16, #tpu.memory_space<vmem>>, vector<1x1x1x5xbf16>
    %4 = vector.shape_cast %3 : vector<1x1x1x5xbf16> to vector<1x5xbf16>
    %5 = arith.extf %4 : vector<1x5xbf16> to vector<1x5xf32>
    %6 = tpu.concatenate %2, %5 in 0 : vector<8x5xf32>, vector<1x5xf32> -> vector<9x5xf32>
    %7 = arith.truncf %6 : vector<9x5xf32> to vector<9x5xbf16>
    %cst = arith.constant 0.000000e+00 : f32
    %8 = vector.broadcast %cst : f32 to vector<8x16xf32>
    %9 = vector.extract_strided_slice %7 {offsets = [0, 0], sizes = [8, 5], strides = [1, 1]} : vector<9x5xbf16> to vector<8x5xbf16>
    %c0_6 = arith.constant 0 : index
    %c0_7 = arith.constant 0 : index
    %10 = vector.load %arg4[%c0_6, %c0_7] : memref<5x16xbf16, #tpu.memory_space<vmem>>, vector<5x16xbf16>
    %cst_8 = arith.constant dense<0.000000e+00> : vector<8x16xf32>
    %11 = tpu.matmul %9, %10, %cst_8 {dimension_numbers = #tpu.dot_dimension_numbers<[1], [0], [0], [1], [0, 0, 1, 1], [], []>} : vector<8x5xbf16>, vector<5x16xbf16>, vector<8x16xf32> -> vector<8x16xf32>
    %12 = arith.addf %8, %11 : vector<8x16xf32>
    %13 = vector.extract_strided_slice %7 {offsets = [1, 0], sizes = [8, 5], strides = [1, 1]} : vector<9x5xbf16> to vector<8x5xbf16>
    %c0_9 = arith.constant 0 : index
    %c0_10 = arith.constant 0 : index
    %14 = vector.load %arg5[%c0_9, %c0_10] : memref<5x16xbf16, #tpu.memory_space<vmem>>, vector<5x16xbf16>
    %cst_11 = arith.constant dense<0.000000e+00> : vector<8x16xf32>
    %15 = tpu.matmul %13, %14, %cst_11 {dimension_numbers = #tpu.dot_dimension_numbers<[1], [0], [0], [1], [0, 0, 1, 1], [], []>} : vector<8x5xbf16>, vector<5x16xbf16>, vector<8x16xf32> -> vector<8x16xf32>
    %16 = arith.addf %12, %15 : vector<8x16xf32>
    %17 = arith.truncf %16 : vector<8x16xf32> to vector<8x16xbf16>
    %18 = arith.extf %17 : vector<8x16xbf16> to vector<8x16xf32>
    %c8_i32 = arith.constant 8 : i32
    %19 = arith.muli %arg1, %c8_i32 : i32
    %20 = tpu.iota {dimensions = array<i32: 0>} : vector<8x1xi32>
    %21 = vector.broadcast %19 : i32 to vector<8x1xi32>
    %22 = arith.addi %21, %20 : vector<8x1xi32>
    %c23_i32 = arith.constant 23 : i32
    %23 = vector.broadcast %c23_i32 : i32 to vector<8x1xi32>
    %24 = arith.cmpi slt, %22, %23 : vector<8x1xi32>
    %c8_i32_12 = arith.constant 8 : i32
    %25 = arith.muli %arg1, %c8_i32_12 : i32
    %c23_i32_13 = arith.constant 23 : i32
    %26 = arith.subi %c23_i32_13, %25 : i32
    %c8_i32_14 = arith.constant 8 : i32
    %27 = arith.minsi %26, %c8_i32_14 : i32
    %28 = arith.sitofp %27 : i32 to f32
    %cst_15 = arith.constant 0.000000e+00 : f32
    %29 = vector.shape_cast %24 : vector<8x1xi1> to vector<8x1xi1>
    %30 = vector.broadcast %29 : vector<8x1xi1> to vector<8x16xi1>
    %31 = vector.broadcast %cst_15 : f32 to vector<8x16xf32>
    %32 = arith.select %30, %18, %31 : vector<8x16xi1>, vector<8x16xf32>
    %cst_16 = arith.constant dense<0.000000e+00> : vector<16xf32>
    %33 = vector.multi_reduction <add>, %32, %cst_16 [0] : vector<8x16xf32> to vector<16xf32>
    %34 = vector.shape_cast %33 : vector<16xf32> to vector<1x16xf32>
    %35 = vector.broadcast %28 : f32 to vector<1x16xf32>
    %36 = arith.divf %34, %35 : vector<1x16xf32>
    %37 = vector.broadcast %36 : vector<1x16xf32> to vector<8x16xf32>
    %38 = arith.subf %18, %37 : vector<8x16xf32>
    %39 = arith.mulf %38, %38 : vector<8x16xf32>
    %cst_17 = arith.constant 0.000000e+00 : f32
    %40 = vector.shape_cast %24 : vector<8x1xi1> to vector<8x1xi1>
    %41 = vector.broadcast %40 : vector<8x1xi1> to vector<8x16xi1>
    %42 = vector.broadcast %cst_17 : f32 to vector<8x16xf32>
    %43 = arith.select %41, %39, %42 : vector<8x16xi1>, vector<8x16xf32>
    %cst_18 = arith.constant dense<0.000000e+00> : vector<16xf32>
    %44 = vector.multi_reduction <add>, %43, %cst_18 [0] : vector<8x16xf32> to vector<16xf32>
    %45 = vector.shape_cast %44 : vector<16xf32> to vector<1x16xf32>
    %c0_i32 = arith.constant 0 : i32
    %46 = arith.cmpi eq, %arg1, %c0_i32 : i32
    %47 = arith.extui %46 : i1 to i32
    %c0_i32_19 = arith.constant 0 : i32
    %48 = arith.cmpi ne, %47, %c0_i32_19 : i32
    scf.if %48 {
      %cst_36 = arith.constant 0.000000e+00 : f32
      %76 = vector.broadcast %cst_36 : f32 to vector<1x16xf32>
      %c0_37 = arith.constant 0 : index
      %c0_38 = arith.constant 0 : index
      %77 = vector.load %arg8[%c0_37, %c0_38] : memref<1x16xf32, #tpu.memory_space<vmem>>, vector<1x16xf32>
      tpu.vector_store %arg8[%c0_37, %c0_38], %76 {strides = array<i32>} : memref<1x16xf32, #tpu.memory_space<vmem>>, vector<1x16xf32>,
      %cst_39 = arith.constant 0.000000e+00 : f32
      %78 = vector.broadcast %cst_39 : f32 to vector<1x16xf32>
      %c0_40 = arith.constant 0 : index
      %c0_41 = arith.constant 0 : index
      %79 = vector.load %arg9[%c0_40, %c0_41] : memref<1x16xf32, #tpu.memory_space<vmem>>, vector<1x16xf32>
      tpu.vector_store %arg9[%c0_40, %c0_41], %78 {strides = array<i32>} : memref<1x16xf32, #tpu.memory_space<vmem>>, vector<1x16xf32>,
    } else {
    }
    %c8_i32_20 = arith.constant 8 : i32
    %49 = arith.muli %arg1, %c8_i32_20 : i32
    %c23_i32_21 = arith.constant 23 : i32
    %50 = arith.minsi %49, %c23_i32_21 : i32
    %51 = arith.sitofp %50 : i32 to f32
    %52 = arith.addf %51, %28 : f32
    %c0_22 = arith.constant 0 : index
    %c0_23 = arith.constant 0 : index
    %53 = vector.load %arg8[%c0_22, %c0_23] : memref<1x16xf32, #tpu.memory_space<vmem>>, vector<1x16xf32>
    %54 = arith.subf %36, %53 : vector<1x16xf32>
    %c0_24 = arith.constant 0 : index
    %c0_25 = arith.constant 0 : index
    %55 = vector.load %arg8[%c0_24, %c0_25] : memref<1x16xf32, #tpu.memory_space<vmem>>, vector<1x16xf32>
    %56 = arith.divf %28, %52 : f32
    %57 = vector.broadcast %56 : f32 to vector<1x16xf32>
    %58 = arith.mulf %54, %57 : vector<1x16xf32>
    %59 = arith.addf %55, %58 : vector<1x16xf32>
    %c0_26 = arith.constant 0 : index
    %c0_27 = arith.constant 0 : index
    %60 = vector.load %arg8[%c0_26, %c0_27] : memref<1x16xf32, #tpu.memory_space<vmem>>, vector<1x16xf32>
    tpu.vector_store %arg8[%c0_26, %c0_27], %59 {strides = array<i32>} : memref<1x16xf32, #tpu.memory_space<vmem>>, vector<1x16xf32>,
    %c0_28 = arith.constant 0 : index
    %c0_29 = arith.constant 0 : index
    %61 = vector.load %arg9[%c0_28, %c0_29] : memref<1x16xf32, #tpu.memory_space<vmem>>, vector<1x16xf32>
    %62 = arith.addf %61, %45 : vector<1x16xf32>
    %63 = arith.mulf %54, %54 : vector<1x16xf32>
    %64 = arith.mulf %51, %28 : f32
    %65 = arith.divf %64, %52 : f32
    %66 = vector.broadcast %65 : f32 to vector<1x16xf32>
    %67 = arith.mulf %63, %66 : vector<1x16xf32>
    %68 = arith.addf %62, %67 : vector<1x16xf32>
    %c0_30 = arith.constant 0 : index
    %c0_31 = arith.constant 0 : index
    %69 = vector.load %arg9[%c0_30, %c0_31] : memref<1x16xf32, #tpu.memory_space<vmem>>, vector<1x16xf32>
    tpu.vector_store %arg9[%c0_30, %c0_31], %68 {strides = array<i32>} : memref<1x16xf32, #tpu.memory_space<vmem>>, vector<1x16xf32>,
    %c2_i32 = arith.constant 2 : i32
    %70 = arith.cmpi eq, %arg1, %c2_i32 : i32
    %71 = arith.extui %70 : i1 to i32
    %c0_i32_32 = arith.constant 0 : i32
    %72 = arith.cmpi ne, %71, %c0_i32_32 : i32
    scf.if %72 {
      %c0_36 = arith.constant 0 : index
      %c0_37 = arith.constant 0 : index
      %76 = vector.load %arg9[%c0_36, %c0_37] : memref<1x16xf32, #tpu.memory_space<vmem>>, vector<1x16xf32>
      %cst_38 = arith.constant 0.0434782617 : f32
      %77 = vector.broadcast %cst_38 : f32 to vector<1x16xf32>
      %78 = arith.mulf %76, %77 : vector<1x16xf32>
      %c0_39 = arith.constant 0 : index
      %c0_40 = arith.constant 0 : index
      %79 = vector.load %arg8[%c0_39, %c0_40] : memref<1x16xf32, #tpu.memory_space<vmem>>, vector<1x16xf32>
      %80 = tpu.concatenate %79, %78 in 0 : vector<1x16xf32>, vector<1x16xf32> -> vector<2x16xf32>
      %81 = vector.shape_cast %80 : vector<2x16xf32> to vector<1x2x16xf32>
      %c0_41 = arith.constant 0 : index
      %c0_42 = arith.constant 0 : index
      %c0_43 = arith.constant 0 : index
      %82 = vector.load %arg7[%c0_41, %c0_42, %c0_43] : memref<1x2x16xf32, #tpu.memory_space<vmem>>, vector<1x2x16xf32>
      tpu.vector_store %arg7[%c0_41, %c0_42, %c0_43], %81 {strides = array<i32>} : memref<1x2x16xf32, #tpu.memory_space<vmem>>, vector<1x2x16xf32>,
    } else {
    }
    %73 = arith.truncf %16 : vector<8x16xf32> to vector<8x16xbf16>
    %74 = vector.shape_cast %73 : vector<8x16xbf16> to vector<1x8x16xbf16>
    %c0_33 = arith.constant 0 : index
    %c0_34 = arith.constant 0 : index
    %c0_35 = arith.constant 0 : index
    %75 = vector.load %arg6[%c0_33, %c0_34, %c0_35] : memref<1x8x16xbf16, #tpu.memory_space<vmem>>, vector<1x8x16xbf16>
    tpu.vector_store %arg6[%c0_33, %c0_34, %c0_35], %74 {strides = array<i32>} : memref<1x8x16xbf16, #tpu.memory_space<vmem>>, vector<1x8x16xbf16>,
    return
  }
  func.func @transform_0(%arg0: i32, %arg1: i32) -> (i32, i32, i32) {
    %c0_i32 = arith.constant 0 : i32
    %c0_i32_0 = arith.constant 0 : i32
    return %arg0, %arg1, %c0_i32 : i32, i32, i32
  }
  func.func @transform_1(%arg0: i32, %arg1: i32) -> (i32, i32, i32, i32) {
    %c0_i32 = arith.constant 0 : i32
    %c0_i32_0 = arith.constant 0 : i32
    %c0_i32_1 = arith.constant 0 : i32
    return %arg0, %arg1, %c0_i32, %c0_i32_0 : i32, i32, i32, i32
  }
  func.func @transform_2(%arg0: i32, %arg1: i32) -> (i32, i32) {
    %c0_i32 = arith.constant 0 : i32
    %c0_i32_0 = arith.constant 0 : i32
    %c0_i32_1 = arith.constant 0 : i32
    return %c0_i32, %c0_i32_0 : i32, i32
  }
  func.func @transform_3(%arg0: i32, %arg1: i32) -> (i32, i32) {
    %c0_i32 = arith.constant 0 : i32
    %c0_i32_0 = arith.constant 0 : i32
    %c0_i32_1 = arith.constant 0 : i32
    return %c0_i32, %c0_i32_0 : i32, i32
  }
  func.func @transform_4(%arg0: i32, %arg1: i32) -> (i32, i32, i32) {
    %c0_i32 = arith.constant 0 : i32
    %c0_i32_0 = arith.constant 0 : i32
    return %arg0, %arg1, %c0_i32 : i32, i32, i32
  }
  func.func @transform_5(%arg0: i32, %arg1: i32) -> (i32, i32, i32) {
    %c0_i32 = arith.constant 0 : i32
    %c0_i32_0 = arith.constant 0 : i32
    %c0_i32_1 = arith.constant 0 : i32
    return %arg0, %c0_i32, %c0_i32_0 : i32, i32, i32
  }
}

</mosaic_0001>

<bundles_post_ra>
// kernel: tpu_custom_call.1
= control target key start
LH: loop header
LB: loop body
LE: loop exit
PB: predicated region body
PF: predicated region fallthrough
CT: control target
= control target key end

     0   :  { %s1079_s0 = inlined_call_operand.vmem [shape: bf16[2,25,5], index: 0, kind: input, shape index: {}]   ;;  %s1080_s1 = inlined_call_operand.vmem [shape: bf16[2,3,1,5], index: 1, kind: input, shape index: {}]   ;;  %s1081_s2 = inlined_call_operand.vmem [shape: bf16[5,16], index: 2, kind: input, shape index: {}]   ;;  %s1082_s3 = inlined_call_operand.vmem [shape: bf16[5,16], index: 3, kind: input, shape index: {}]   ;;  %s1083_s4 = inlined_call_operand.vmem [shape: bf16[2,24,16], index: 4, kind: output, shape index: {0}]   ;;  %s1084_s5 = inlined_call_operand.hbm [shape: f32[2,2,16], index: 5, kind: output, shape index: {1}]  }
   0x1   :  { %1089 = sst [smem:[#allocation12_spill]] %s1081_s2 }
   0x2   :  { %1090 = sst [smem:[#allocation13_spill]] %s1082_s3 }
   0x3   :  { %11 = vsyncpa [#allocation5], 0 }
   0x4   :  { %13 = vsyncpa [#allocation5 + $0x1], 0  ;;  %s896_s18 = smov 0   ;;  %s898_s19 = smov 0  }
   0x5   :  { %s900_s20 = smov 0   ;;  %s902_s21 = smov 0  }
   0x6   :  { %s904_s22 = smov 0   ;;  %s906_s23 = smov 0  }
   0x7   :  { %s908_s24 = smov 0   ;;  %s910_s25 = smov 0  }
   0x8 LB: > { %1091 = sst [smem:[#allocation7_spill]] %s851_s23  ;;  %s647_s26 = sadd.s32 4294967295, %s859_s25   ;;  %s859_s25 = sphi %s910_s25, %s19_s25   ;;  %s855_s24 = sphi %s908_s24, %s1105_s24   ;;  %s851_s23 = sphi %s906_s23, %s1104_s23   ;;  %s847_s22 = sphi %s904_s22, %s1103_s22   ;;  %s843_s21 = sphi %s902_s21, %s1102_s21   ;;  %s839_s20 = sphi %s900_s20, %s1108_s20   ;;  %s835_s19 = sphi %s898_s19, %s1107_s19   ;;  %s831_s18 = sphi %s896_s18, %s1106_s18  }
   0x9   : > { %1092 = sst [smem:[#allocation8_spill]] %s855_s24  ;;  %s648_s27 = sadd.s32 4294967294, %s859_s25  }
   0xa   : > { %s28_s28 = sadd.s32 1, %s851_s23  ;;  %s31_s29 = sadd.s32 1, %s855_s24 }
   0xb   : > { %p29_p0 = scmp.ge.s32.totalorder %s28_s28, 3  ;;  %p174_p1 = scmp.ne.s32.totalorder %s839_s20, %s835_s19 }
   0xc   : > { %p175_p2 = scmp.eq.s32.totalorder %s647_s26, 5  ;;  %p180_p4 = scmp.ne.s32.totalorder %s835_s19, %s831_s18 }
   0xd   : > { %s1110_s28 = smov (%p29_p0, %s28_s28), 0  ;;  %s1112_s29 = smov (!%p29_p0, %s31_s29), %s855_s24 }
   0xe   : > { %1093 = sst [smem:[#allocation9_spill]] %s1110_s28  ;;  %p945_p3 = por %p175_p2, %p174_p1 }
   0xf   : > { %p33_p5 = scmp.ge.s32.totalorder %s1112_s29, 2  ;;  %p181_p6 = scmp.eq.s32.totalorder %s648_s27, 5 }
  0x10   : > { %p651_p7 = scmp.ge.s32.totalorder %s859_s25, 1  ;;  %p226_p8 = scmp.lt.s32.totalorder %s859_s25, 7 }
  0x11   : > { %s1114_s29 = smov (%p33_p5, %s1112_s29), 0  ;;  %p955_p9 = por %p181_p6, %p180_p4 }
  0x12   : > { %1095 = sst [smem:[#allocation10_spill]] %s1114_s29  ;;  %p227_p10 = pnand %p651_p7, %p226_p8 }
  0x13   : > { %s161_s7 = ssub.s32 %s855_s24, %s1114_s29  ;;  %s164_s8 = sadd.s32 1, %s839_s20  ;;  %vm314_vm0 = vcmask (!%p227_p10), 1041408   ;;  %vm315_vm1 = vcmask (!%p227_p10), 1042432   ;;  %v861_v1 = vmov (!%p227_p10), 0.0   ;;  %v862_v2 = vmov (!%p227_p10), 65535  }
  0x14   : > { %p162_p11 = scmp.eq.s32.totalorder %s161_s7, 0  ;;  %230 = sbr.rel (%p227_p10) target bundleno = 413 (0x19d), region = 36  ;;  %676 = vmatprep.subr.bf16.mxu0 (!%p227_p10), %v861_v1  ;;  %v316_v3 = vsel (!%p227_p10), %vm314_vm0, 4294967295, %v862_v2  ;;  %670 = vmatprep.subr.bf16.mxu1 (!%p227_p10), %v861_v1  ;;  %vm863_vm2 = vmmov (!%p227_p10), 0   ;;  %vm310_vm3 = vcmask (!%p227_p10), 39936   ;;  %v409_v15 = vlaneseq (!%p227_p10) }
  0x15   : > { %s1098_s2 = sld [smem:[#allocation12_spill]] (!%p227_p10)  ;;  %s1085_s12 = sand.u32 (!%p227_p10), 1, %s835_s19   ;;  %v317_v5 = vsel (!%p227_p10), %vm315_vm1, %v316_v3, 0  ;;  %678 = vmatprep.mubr.msk.bf16.mxu0 (!%p227_p10), %vm863_vm2, %v861_v1  ;;  %672 = vmatprep.mubr.msk.bf16.mxu1 (!%p227_p10), %vm863_vm2, %v861_v1  ;;  %vm421_vm5 = vcmask (!%p227_p10), 130048  }
  0x16   : > { %s963_s9 = scalar_select %p162_p11, %s839_s20, %s164_s8  }
  0x17   : > { %s1099_s3 = sld [smem:[#allocation13_spill]] (!%p227_p10)  ;;  %p272_p12 = scmp.lt.s32.totalorder (!%p227_p10), %s847_s22, 1  ;;  %v997_v19 = vshrl.u32 (!%p227_p10), %v409_v15, 7 }
  0x18   : > { %1097 = sst [smem:[#allocation11_spill]] %s963_s9  ;;  %s975_s15 = sshll.u32 (!%p227_p10), %s1085_s12, 1 }
  0x19   : > { %p274_p13 = scmp.lt.s32.totalorder (!%p227_p10), %s843_s21, 3  ;;  %p282_p0 = scmp.lt.s32.totalorder (!%p227_p10), %s843_s21, 2 }
  0x1a   : > { %s271_s23 = scalar_lea.vmem (!%p227_p10), [#allocation4], %s975_s15  ;;  %p660_p2 = scmp.ne.s32.totalorder (!%p227_p10), %s843_s21, 0 }
  0x1b   : > { %v301_v0 = vld [vmem:[%s1098_s2] sm:$0x7]  ;;  %s273_s16 = scalar_select %p272_p12, %s847_s22, 1 }
  0x1c   : > { %v364_v6 = vand.u32 %v317_v5, %v301_v0  ;;  %s275_s17 = scalar_select %p274_p13, %s843_s21, 3 }
  0x1d   : > { %v302_v4 = vld [vmem:[%s1099_s3] sm:$0x7]  ;;  %s653_s26 = sshll.u32 %s273_s16, 2  ;;  %s683_s8 = smul.u32 3, %s273_s16  ;;  %vm446_vm6 = vcmask (!%p660_p2), 122880   ;;  %v864_v51 = vmov (!%p660_p2), 0.0  }
  0x1e   : > { %v319_v7 = vand.u32 %v317_v5, %v302_v4  ;;  %677 = vmatpush3.bf16.msra.mxu0 %v364_v6  ;;  %s277_s27 = sadd.s32 %s653_s26, %s275_s17  ;;  %s994_s16 = sshll.u32 %s843_s21, 3  ;;  %447 = vst.msk [vmem:[#allocation2] sm:$0x1] (!%p660_p2), %vm446_vm6, %v864_v51  ;;  %448 = vst.msk [vmem:[#allocation3] sm:$0x1] (!%p660_p2), %vm446_vm6, %v864_v51 }
  0x1f   : > { %s654_s7 = sshll.u32 %s277_s27, 2  ;;  %s414_s2 = ssub.s32 23, %s994_s16  ;;  %v411_v20 = vstv %s994_s16 }
  0x20   : > { %671 = vmatpush3.bf16.msra.mxu1 %v319_v7  ;;  %s279_s13 = scalar_lea.vmem %s1079_s0, %s654_s7  ;;  %p415_p1 = scmp.lt.s32.totalorder %s414_s2, 8  ;;  %v412_v23 = vadd.s32 %v411_v20, %v997_v19 }
  0x21   : > { %s283_s14 = scalar_select %p282_p0, %s843_s21, 2  ;;  %v296_v8 = vld [vmem:[%s279_s13] sm:$0xf] }
  0x22   : > { %s1116_s2 = smov (!%p415_p1, %s414_s2), 8  ;;  %vm413_vm4 = vcmp.lt.s32.totalorder %v412_v23, 23 }
  0x23   : > { %s285_s12 = sadd.s32 %s683_s8, %s283_s14  ;;  %s1001_s3 = scvt.s32.f32 %s1116_s2 }
  0x24   : > { %s286_s29 = scalar_lea.vmem %s1080_s1, %s285_s12  ;;  %s655_s28 = sshll.u32 %s285_s12, 2 }
  0x25   : > { %s991_s9 = scalar_lea.vmem %s1083_s4, %s655_s28  ;;  %v298_v9 = vld [vmem:[%s286_s29] sm:$0x1]  ;;  %v429_v30 = vstv %s1001_s3 }
  0x26   : > { %v656_v10 = vcombine.low %v296_v8, %v298_v9  ;;  %761 = vrcp.f32 %v429_v30 }
  0x28   : > { %679 = vmatmul.mubr.msk.bf16.vlgmr.msra.gmra.mrb[0].mxu0 %vm310_vm3, %v656_v10  ;;  %v304_v11 = vshrl.u32 %v656_v10, 16  ;;  %v306_v12 = vshll.u32 %v656_v10, 16 }
  0x2a   : > { %v308_v13 = vrot.slane %v306_v12, 1 }
  0x2c   : > { %v309_v14 = vor.u32 %v308_v13, %v304_v11 }
  0x2e   : > { %673 = vmatmul.mubr.msk.bf16.vlgmr.msra.gmra.mrb[0].mxu1 %vm310_vm3, %v309_v14 }
  0x30   : > { %v762_v38 = vpop.eup %761 }
  0xfb   : > { %v400_v16 = vpop.f32.mrb[0].mxu0 }
  0xfc   : > { %v680_v17 = vpop.f32.mrb[1].mxu0 }
  0xfd   : > { %v403_v18 = vpop.f32.mrb[2].mxu0 }
  0xfe   : > { %v681_v21 = vpop.f32.mrb[3].mxu0 }
 0x101   : > { %v355_v22 = vpop.f32.mrb[0].mxu1 }
 0x102   : > { %v401_v24 = vadd.f32 %v400_v16, %v355_v22  ;;  %v674_v25 = vpop.f32.mrb[1].mxu1 }
 0x103   : > { %v358_v26 = vpop.f32.mrb[2].mxu1 }
 0x104   : > { %v1003_v27 = vpack.c.bf16 %v401_v24, %v401_v24  ;;  %v675_v28 = vpop.f32.mrb[3].mxu1 }
 0x106   : > { %v407_v29 = vunpack.c.l.bf16 %v1003_v27 }
 0x108   : > { %v420_v31 = vsel %vm413_vm4, %v407_v29, 0.0 }
 0x109   : > { %v422_v32 = vsel %vm421_vm5, %v420_v31, 0.0 }
 0x10a   : > { %v423_v33 = vrot.slane %v422_v32, 4 }
 0x10c   : > { %v424_v34 = vadd.f32 %v423_v33, %v422_v32 }
 0x10e   : > { %v425_v35 = vrot.slane %v424_v34, 2 }
 0x110   : > { %v426_v36 = vadd.f32 %v425_v35, %v424_v34 }
 0x112   : > { %v427_v37 = vrot.slane %v426_v36, 1 }
 0x114   : > { %v428_v39 = vadd.f32 %v427_v37, %v426_v36 }
 0x116   : > { %v431_v40 = vmul.f32 %v762_v38, %v428_v39 }
 0x118   : > { %v432_v41 = vsub.f32 %v407_v29, %v431_v40 }
 0x11a   : > { %v433_v42 = vmul.f32 %v432_v41, %v432_v41 }
 0x11c   : > { %v434_v43 = vsel %vm413_vm4, %v433_v42, 0.0 }
 0x11d   : > { %v435_v44 = vsel %vm421_vm5, %v434_v43, 0.0 }
 0x11e   : > { %v436_v45 = vrot.slane %v435_v44, 4 }
 0x120   : > { %v437_v46 = vadd.f32 %v436_v45, %v435_v44 }
 0x122   : > { %v438_v47 = vrot.slane %v437_v46, 2  ;;  %445 = sbr.rel (%p660_p2) target bundleno = 297 (0x129), region = 40 }
 0x124   : > { %v439_v48 = vadd.f32 %v438_v47, %v437_v46 }
 0x126   : > { %v440_v49 = vrot.slane %v439_v48, 1 }
 0x128   : > { %v441_v50 = vadd.f32 %v440_v49, %v439_v48 }
 0x129 PF: > { %p449_p4 = scmp.lt.s32.totalorder %s994_s16, 23  ;;  %v453_v54 = vld [vmem:[#allocation2] sm:$0x1]  ;;  %v464_v56 = vld [vmem:[#allocation3] sm:$0x1]  ;;  %vm462_vm7 = vcmask 122880  }
 0x12a   : > { %v454_v55 = vsub.f32 %v431_v40, %v453_v54  ;;  %v465_v59 = vadd.f32 %v464_v56, %v441_v50  ;;  %p661_p5 = scmp.ne.s32.totalorder %s843_s21, 2 }
 0x12b   : > { %s1118_s16 = smov (!%p449_p4, %s994_s16), 23  ;;  %v486_v2 = vsub.s32 (!%p661_p5), 0, %v997_v19  ;;  %vm489_vm8 = vcmask (!%p661_p5), 1040384   ;;  %vm491_vm9 = vcmask (!%p661_p5), 123904  }
 0x12c   : > { %s451_s24 = scvt.s32.f32 %s1118_s16  ;;  %v466_v57 = vmul.f32 %v454_v55, %v454_v55 }
 0x12e   : > { %s452_s28 = sadd.f32 %s451_s24, %s1001_s3  ;;  %s467_s29 = smul.f32 %s451_s24, %s1001_s3 }
 0x130   : > { %v455_v52 = vstv %s452_s28 }
 0x131   : > { %763 = vrcp.f32 %v455_v52 }
 0x13b   : > { %v764_v53 = vpop.eup %763 }
 0x13c   : > { %684 = vpush %v764_v53 }
 0x16d   : > { %s685_s12 = spop %684 }
 0x16e   : > { %s458_s17 = smul.f32 %s685_s12, %s1001_s3 }
 0x16f   : > { %s471_s26 = smul.f32 %s685_s12, %s467_s29 }
 0x170   : > { %v459_v58 = vstv %s458_s17  ;;  %479 = sbr.rel (%p661_p5) target bundleno = 388 (0x184), region = 44 }
 0x171   : > { %v460_v60 = vmul.f32 %v459_v58, %v454_v55  ;;  %v472_v61 = vstv %s471_s26 }
 0x172   : > { %v473_v62 = vmul.f32 %v472_v61, %v466_v57 }
 0x173   : > { %v461_v63 = vadd.f32 %v460_v60, %v453_v54 }
 0x174   : > { %v474_v0 = vadd.f32 %v473_v62, %v465_v59 }
 0x175   : > { %463 = vst.msk [vmem:[#allocation2] sm:$0x1] %vm462_vm7, %v461_v63 }
 0x176   : > { %475 = vst.msk [vmem:[#allocation3] sm:$0x1] %vm462_vm7, %v474_v0 }
 0x17c   : > { %v482_v4 = vld [vmem:[#allocation2] sm:$0x1] }
 0x17d   : > { %v480_v1 = vld [vmem:[#allocation3] sm:$0x1] }
 0x17e   : > { %v481_v3 = vmul.f32 0.04347826, %v480_v1 }
 0x180   : > { %v487_v5 = vrot.slane %v481_v3, %v486_v2 }
 0x182   : > { %v490_v6 = vsel %vm489_vm8, %v482_v4, %v487_v5 }
 0x183   : > { %492 = vst.msk [vmem:[%s271_s23] sm:$0x3] %vm491_vm9, %v490_v6 }
 0x184 PF: > { %vm493_vm10 = vcmask 125952   ;;  %s663_s21 = sshll.u32 %s847_s22, 5  ;;  %s520_s10 = sshll.u32 %s271_s23, 4  ;;  %s521_s10 = int_to_ptr.vmem [resolvable:$true] %s520_s10 }
 0x185   : > { %494 = vst.msk [vmem:[%s991_s9] sm:$0xf] %vm493_vm10, %v1003_v27  ;;  %s1028_s8 = scalar_lea.hbm %s1084_s5, %s663_s21  ;;  %s1100_s11 = sand.u32 1, %s835_s19  }
 0x186   : > { %s504_s13 = scalar_lea.sflag [#allocation5], %s1100_s11  ;;  %s765_s14 = scalar_lea.vmem %s521_s10, 32 }
 0x187   : > { %p766_p6 = scmp.ne.s32.totalorder %s521_s10, %s765_s14  ;;  %s865_s16 = smov [#allocation4]  }
 0x188   : > { %s769_s2 = sshll.u32 %s865_s16, 4  ;;  %s770_s2 = int_to_ptr.vmem [resolvable:$false] %s769_s2 }
 0x189   : > { %p767_p7 = pnand %p766_p6, %p945_p3  ;;  %s771_s22 = scalar_lea.vmem %s770_s2, 64 }
 0x18a   : > { %p772_p10 = scmp.lt.s32.totalorder %s521_s10, %s770_s2  ;;  %p773_p11 = scmp.lt.s32.totalorder %s771_s22, %s765_s14 }
 0x18b   : > { %p768_p8 = pneg %p767_p7 }
 0x18c   : > { %p774_p12 = por %p773_p11, %p772_p10 }
 0x18e   : > { %p775_p13 = pnand %p774_p12, %p768_p8 }
 0x190   : > { %778 = shalt.err (!%p775_p13)
}
 0x191   : > { %s779_s9 = scalar_lea.hbm %s1028_s8, 32  ;;  %s783_s23 = scalar_lea.hbm %s1084_s5, 64 }
 0x192   : > { %p780_p0 = scmp.ne.s32.totalorder %s1028_s8, %s779_s9  ;;  %p784_p4 = scmp.lt.u32.totalorder %s1028_s8, %s1084_s5 }
 0x193   : > { %p785_p5 = scmp.lt.u32.totalorder %s783_s23, %s779_s9  ;;  %p787_p7 = scmp.lt.u32.totalorder %s779_s9, %s1028_s8 }
 0x194   : > { %p781_p1 = pnand %p780_p0, %p945_p3 }
 0x195   : > { %p786_p6 = por %p785_p5, %p784_p4 }
 0x196   : > { %p782_p2 = pneg %p781_p1 }
 0x197   : > { %p788_p8 = por %p787_p7, %p786_p6 }
 0x199   : > { %p789_p10 = pnand %p788_p8, %p782_p2 }
 0x19b   : > { %792 = shalt.err (!%p789_p10)
}
 0x19c   : > { %686 = dma.vmem_to_hbm [thread:$0]  (%p945_p3), %s521_s10, 32, %s1028_s8, %s504_s13  }
 0x19d PF: > { %p692_p11 = scmp.ge.s32.totalorder %s859_s25, 2  ;;  %s543_s29 = sand.u32 1, %s831_s18  }
 0x19e   : > { %s544_s12 = scalar_lea.sflag [#allocation5], %s543_s29 }
 0x19f   : > { %p689_p12 = pnand %p692_p11, %p955_p9 }
 0x1a1   : > { %826 = dma.done.wait (!%p689_p12), %s544_s12, 32  }
 0x1a2   : > { %828 = vsyncadd (!%p689_p12), %s544_s12, 4294967264  ;;  %s19_s25 = sadd.s32 1, %s859_s25   ;;  %s1101_s17 = sld [smem:[#allocation11_spill]] }
 0x1a3   : > { %p16_p13 = scmp.ge.s32.totalorder %s19_s25, 8   ;;  %s1102_s21 = sld [smem:[#allocation7_spill]] }
 0x1a4   : > { %s1103_s22 = sld [smem:[#allocation8_spill]]  ;;  %s1104_s23 = sld [smem:[#allocation9_spill]] }
 0x1a5   : > { %s1105_s24 = sld [smem:[#allocation10_spill]]  ;;  %s1106_s18 = smov %s835_s19 }
 0x1a6   : > { %s1107_s19 = smov %s839_s20  ;;  %18 = sbr.rel (!%p16_p13) target bundleno = 8 (0x8), region = 94 }
 0x1a8   : > { %s1108_s20 = smov %s1101_s17 }
 0x1ad   :  { %549 = vsyncpa [#allocation5], 1 }
 0x1ae   :  { %551 = vsyncpa [#allocation5 + $0x1], 1 }

</bundles_post_ra>
